<compile_context>
chip_gen: v7x
topology: tpu7x:2x2x1
jax: 0.10.0
libtpu: 0.0.40
codegen_flags: <defaults>
</compile_context>

<pallas_src>
import jax
import jax.numpy as jnp
from jax.experimental import pallas as pl
from jax.experimental.pallas import tpu as pltpu

_LANE = 128
_SUBLANE = 8          # f32 sublane tile
_BF16_ROW_TILE = 16   # bf16 packs 2 rows per sublane -> fold is a view when S % 16 == 0


def _round_up(n, m):
    return (n + m - 1) // m * m


def _self_attention_kernel(x_ref, mask_ref, w1t_ref, b1_ref, w2_ref, o_ref):
    # x_ref:    (BB, S, D)  bf16   input block (HBM bytes halved vs f32)
    # mask_ref: (BB, S, 1)  int32  nonzero => masked out
    # w1t_ref:  (D, Hp)     bf16   linear1.weight^T, zero-padded along H to Hp
    # b1_ref:   (1, Hp)     f32
    # w2_ref:   (1, Hp)     f32    linear2.weight row, zero-padded
    # o_ref:    (BB, D)     f32    context output block
    BB, S, D = x_ref.shape

    # linear1 + tanh: one MXU matmul with M = BB*S rows, f32 accumulation.
    xf = x_ref[...].reshape(BB * S, D)                    # view: S % 16 == 0 (bf16 tile)
    h = jnp.tanh(
        jnp.dot(xf, w1t_ref[...], preferred_element_type=jnp.float32)
        + b1_ref[...]                                     # (1, Hp) broadcasts over rows
    )                                                     # (BB*S, Hp) f32

    # linear2 has a single output column -> VPU multiply + XLU lane reduce (no N=1 MXU).
    # linear2.bias is dropped: softmax is shift-invariant, it cannot change alpha/context.
    s = jnp.sum(h * w2_ref[...], axis=-1, keepdims=True)  # (BB*S, 1)
    s = s.reshape(BB, S, 1)                               # view: S % 8 == 0

    # Finite sentinel instead of -inf (all-masked rows -> uniform softmax, not NaN).
    s = jnp.where(mask_ref[...] != 0, jnp.float32(-1e30), s)

    # Softmax over the sequence (sublane) axis, independently per batch row, f32.
    m = jnp.max(s, axis=1, keepdims=True)                 # (BB, 1, 1)
    e = jnp.exp(s - m)                                    # (BB, S, 1)
    denom = jnp.sum(e, axis=1, keepdims=True)             # (BB, 1, 1)
    alpha = e * pl.reciprocal(denom, approx=True)         # EUP reciprocal

    # context = sum_s alpha[s] * x[s, :]   (S far too small to feed the MXU here)
    o_ref[...] = jnp.sum(alpha * x_ref[...].astype(jnp.float32), axis=1)   # (BB, D)


def _vmem_budget_bytes():
    """~3/4 of physical VMEM: ~96 MiB on v5e/v6e (128 MiB), ~48 MiB on v7x (64 MiB)."""
    cap = None
    try:
        cap = getattr(pltpu.get_tpu_info(), "vmem_capacity_bytes", None)
    except Exception:
        cap = None
    if not cap:
        cap = 64 * 1024 * 1024          # conservative (v7x-sized) fallback
    return int(cap) * 3 // 4


def _block_vmem_bytes(bb, sp, d, hp):
    """Rough per-step VMEM footprint; blocked operands are double-buffered."""
    d_l, hp_l = _round_up(d, _LANE), _round_up(hp, _LANE)
    x_blk = bb * sp * d_l * 2                    # bf16 x block
    mask_blk = bb * sp * _LANE * 4               # (bb,S,1) int32: lane dim pads to 128
    out_blk = bb * d_l * 4                       # f32 output block
    weights = d_l * hp_l * 2 + 2 * hp_l * 4      # w1t (bf16) + b1 + w2 rows
    h_tmp = bb * sp * hp_l * 4                   # f32 matmul/tanh result
    col_tmp = 4 * bb * sp * _LANE * 4            # s / e / alpha / where lane-padded temps
    x_f32 = bb * sp * d_l * 4                    # f32 copy of x for the weighted sum
    return 2 * (x_blk + mask_blk + out_blk + weights) + h_tmp + col_tmp + x_f32


def _choose_batch_block(batch, sp, d, hp, vmem_budget, target_rows):
    """Pick the per-step batch block bb and the padded batch Bp = grid_b * bb."""
    if batch <= _SUBLANE:
        return batch, batch          # tiny batch: one block; bb == full batch dim is legal
    # Largest bb (multiple of 8) meeting the row target and the VMEM budget.
    bb_cap = max(_SUBLANE, (target_rows // max(sp, 1)) // _SUBLANE * _SUBLANE)
    while bb_cap > _SUBLANE and _block_vmem_bytes(bb_cap, sp, d, hp) > vmem_budget:
        bb_cap = max(_SUBLANE, (bb_cap // 2) // _SUBLANE * _SUBLANE)
    n_steps = max(1, pl.cdiv(batch, bb_cap))
    if batch >= 2 * _SUBLANE:
        # >= 2 grid steps: shards the batch across v7x's two TensorCores and gives the
        # DMA pipeline something to overlap with on every generation.
        n_steps = max(n_steps, 2)
    bb = _round_up(pl.cdiv(batch, n_steps), _SUBLANE)
    return bb, bb * n_steps


def self_attention_pallas(x, mask, w1, b1, w2, b2=None, *, target_block_rows=1024):
    """Forward of SelfAttention.

    x: (B,S,D) float; mask: (B,S) bool/int (nonzero = mask out); w1: (H,D); b1: (H,);
    w2: (1,H); b2: (1,).  b2 is accepted for parity with the nn.Module but unused
    (softmax shift invariance).  Dropout (p=0 / eval) is a no-op.
    """
    del b2
    B, S, D = x.shape
    H = w1.shape[0]

    # S -> multiple of 16 so in-kernel bf16 reshapes are layout views (pad positions are
    # fully masked => contribute exactly 0).  H -> multiple of 128 (weights only, zero
    # HBM cost on the x stream).  D is intentionally NOT padded.
    sp = _round_up(S, _BF16_ROW_TILE)
    hp = _round_up(H, _LANE)

    vmem_budget = _vmem_budget_bytes()
    bb, bp = _choose_batch_block(B, sp, D, hp, vmem_budget, target_block_rows)
    grid_b = bp // bb

    # Operand prep: bf16 on the HBM/MXU path, f32 elsewhere.  Batch pad rows are zero
    # and fully masked; they yield a finite (uniform-softmax) result and are sliced off.
    x_p = jnp.zeros((bp, sp, D), jnp.bfloat16).at[:B, :S, :].set(x.astype(jnp.bfloat16))
    mask_p = jnp.ones((bp, sp, 1), jnp.int32).at[:B, :S, 0].set(mask.astype(jnp.int32))
    w1t_p = jnp.zeros((D, hp), jnp.bfloat16).at[:, :H].set(
        jnp.transpose(w1).astype(jnp.bfloat16))
    b1_p = jnp.zeros((1, hp), jnp.float32).at[0, :H].set(b1.astype(jnp.float32))
    w2_p = jnp.zeros((1, hp), jnp.float32).at[0, :H].set(w2.reshape(-1).astype(jnp.float32))

    out = pl.pallas_call(
        _self_attention_kernel,
        out_shape=jax.ShapeDtypeStruct((bp, D), jnp.float32),
        grid=(grid_b,),
        in_specs=[
            pl.BlockSpec((bb, sp, D), lambda b: (b, 0, 0)),   # x block (bf16)
            pl.BlockSpec((bb, sp, 1), lambda b: (b, 0, 0)),   # mask block (int32)
            # Grid-invariant weights (constant index_map -> no per-step re-fetch).  At
            # large D,H, pipeline_mode=pl.Buffered(1) would drop the duplicate buffer.
            pl.BlockSpec((D, hp), lambda b: (0, 0)),          # W1^T (bf16, resident)
            pl.BlockSpec((1, hp), lambda b: (0, 0)),          # b1 (f32)
            pl.BlockSpec((1, hp), lambda b: (0, 0)),          # w2 row (f32)
        ],
        out_specs=pl.BlockSpec((bb, D), lambda b: (b, 0)),    # lane-dense (B, D) output
        compiler_params=pltpu.CompilerParams(
            dimension_semantics=("parallel",),
            vmem_limit_bytes=vmem_budget,                     # per-generation budget
        ),
    )(x_p, mask_p, w1t_p, b1_p, w2_p)

    return out[:B]


def self_attention_ref(x, mask, w1, b1, w2, b2):
    """Pure-JAX reference mirroring the PyTorch forward (f32, -inf masking, b2 kept)."""
    h = jnp.tanh(jnp.einsum("bsd,hd->bsh", x, w1) + b1)            # linear1 + tanh
    s = jnp.einsum("bsh,oh->bso", h, w2)[..., 0] + b2[0]           # linear2 -> (B, S)
    s = jnp.where(mask, -jnp.inf, s)
    alpha = jax.nn.softmax(s, axis=-1)
    return jnp.einsum("bs,bsd->bd", alpha, x)                      # bmm + squeeze


if __name__ == "__main__":
    key = jax.random.PRNGKey(0)
    B, S, D, H = 2, 8, 32, 32

    k_x, k_m, k_w1, k_b1, k_w2, k_b2 = jax.random.split(key, 6)

    x = jax.random.normal(k_x, (B, S, D), dtype=jnp.float32)
    # boolean mask, True = masked; keep position 0 unmasked so the -inf reference is finite
    mask = jax.random.uniform(k_m, (B, S)) < 0.3
    mask = mask.at[:, 0].set(False)

    # Parameter shapes follow nn.Linear(D, H) and nn.Linear(H, 1)
    w1 = jax.random.normal(k_w1, (H, D), dtype=jnp.float32) * 0.1
    b1 = jax.random.normal(k_b1, (H,), dtype=jnp.float32) * 0.1
    w2 = jax.random.normal(k_w2, (1, H), dtype=jnp.float32) * 0.1
    b2 = jax.random.normal(k_b2, (1,), dtype=jnp.float32) * 0.1

    out = jax.block_until_ready(self_attention_pallas(x, mask, w1, b1, w2, b2))
    ref = self_attention_ref(x, mask, w1, b1, w2, b2)

    # Tolerance covers the bf16 x / W1^T path and the EUP approximate reciprocal.
    if not jnp.allclose(out, ref, atol=3e-2, rtol=3e-2):
        max_err = jnp.max(jnp.abs(out - ref))
        raise AssertionError(f"Pallas kernel does not match reference (max |err| = {max_err})")

    print("KERNEL_OK")
</pallas_src>

<mosaic_0001>
module attributes {stable_mosaic.version = 11 : i64} {
  func.func @_self_attention_kernel(%arg0: i32, %arg1: memref<2x16x32xbf16, #tpu.memory_space<vmem>>, %arg2: memref<2x16x1xi32, #tpu.memory_space<vmem>>, %arg3: memref<32x128xbf16, #tpu.memory_space<vmem>>, %arg4: memref<1x128xf32, #tpu.memory_space<vmem>>, %arg5: memref<1x128xf32, #tpu.memory_space<vmem>>, %arg6: memref<2x32xf32, #tpu.memory_space<vmem>>) attributes {dimension_semantics = [#tpu.dimension_semantics<parallel>], iteration_bounds = array<i64: 1>, scalar_prefetch = 0 : i64, scratch_operands = 0 : i64, tpu.core_type = #tpu.core_type<tc>, window_params = [{transform_indices = @transform_0, window_bounds = array<i64: 2, 16, 32>}, {transform_indices = @transform_1, window_bounds = array<i64: 2, 16, 1>}, {pipeline_mode = #tpu.pipeline_mode<synchronous>, transform_indices = @transform_2, window_bounds = array<i64: 32, 128>}, {pipeline_mode = #tpu.pipeline_mode<synchronous>, transform_indices = @transform_3, window_bounds = array<i64: 1, 128>}, {pipeline_mode = #tpu.pipeline_mode<synchronous>, transform_indices = @transform_4, window_bounds = array<i64: 1, 128>}, {transform_indices = @transform_5, window_bounds = array<i64: 2, 32>}]} {
    %c0 = arith.constant 0 : index
    %c0_0 = arith.constant 0 : index
    %c0_1 = arith.constant 0 : index
    %0 = vector.load %arg1[%c0, %c0_0, %c0_1] : memref<2x16x32xbf16, #tpu.memory_space<vmem>>, vector<2x16x32xbf16>
    %1 = vector.shape_cast %0 : vector<2x16x32xbf16> to vector<32x32xbf16>
    %c0_2 = arith.constant 0 : index
    %c0_3 = arith.constant 0 : index
    %2 = vector.load %arg3[%c0_2, %c0_3] : memref<32x128xbf16, #tpu.memory_space<vmem>>, vector<32x128xbf16>
    %cst = arith.constant dense<0.000000e+00> : vector<32x128xf32>
    %3 = tpu.matmul %1, %2, %cst {dimension_numbers = #tpu.dot_dimension_numbers<[1], [0], [0], [1], [0, 0, 1, 1], [], []>} : vector<32x32xbf16>, vector<32x128xbf16>, vector<32x128xf32> -> vector<32x128xf32>
    %c0_4 = arith.constant 0 : index
    %c0_5 = arith.constant 0 : index
    %4 = vector.load %arg4[%c0_4, %c0_5] : memref<1x128xf32, #tpu.memory_space<vmem>>, vector<1x128xf32>
    %5 = vector.broadcast %4 : vector<1x128xf32> to vector<32x128xf32>
    %6 = arith.addf %3, %5 : vector<32x128xf32>
    %7 = math.tanh %6 : vector<32x128xf32>
    %c0_6 = arith.constant 0 : index
    %c0_7 = arith.constant 0 : index
    %8 = vector.load %arg5[%c0_6, %c0_7] : memref<1x128xf32, #tpu.memory_space<vmem>>, vector<1x128xf32>
    %9 = vector.broadcast %8 : vector<1x128xf32> to vector<32x128xf32>
    %10 = arith.mulf %7, %9 : vector<32x128xf32>
    %cst_8 = arith.constant dense<0.000000e+00> : vector<32xf32>
    %11 = vector.multi_reduction <add>, %10, %cst_8 [1] : vector<32x128xf32> to vector<32xf32>
    %12 = vector.shape_cast %11 : vector<32xf32> to vector<32x1xf32>
    %13 = vector.shape_cast %12 : vector<32x1xf32> to vector<2x16x1xf32>
    %c0_9 = arith.constant 0 : index
    %c0_10 = arith.constant 0 : index
    %c0_11 = arith.constant 0 : index
    %14 = vector.load %arg2[%c0_9, %c0_10, %c0_11] : memref<2x16x1xi32, #tpu.memory_space<vmem>>, vector<2x16x1xi32>
    %c0_i32 = arith.constant 0 : i32
    %15 = vector.broadcast %c0_i32 : i32 to vector<2x16x1xi32>
    %16 = arith.cmpi ne, %14, %15 : vector<2x16x1xi32>
    %cst_12 = arith.constant -1.000000e+30 : f32
    %17 = vector.broadcast %cst_12 : f32 to vector<2x16x1xf32>
    %18 = arith.select %16, %17, %13 : vector<2x16x1xi1>, vector<2x16x1xf32>
    %cst_13 = arith.constant dense<0xFF800000> : vector<2x1xf32>
    %19 = vector.multi_reduction <maximumf>, %18, %cst_13 [1] : vector<2x16x1xf32> to vector<2x1xf32>
    %20 = vector.shape_cast %19 : vector<2x1xf32> to vector<2x1x1xf32>
    %21 = vector.broadcast %20 : vector<2x1x1xf32> to vector<2x16x1xf32>
    %22 = arith.subf %18, %21 : vector<2x16x1xf32>
    %23 = math.exp %22 : vector<2x16x1xf32>
    %cst_14 = arith.constant dense<0.000000e+00> : vector<2x1xf32>
    %24 = vector.multi_reduction <add>, %23, %cst_14 [1] : vector<2x16x1xf32> to vector<2x1xf32>
    %25 = vector.shape_cast %24 : vector<2x1xf32> to vector<2x1x1xf32>
    %26 = tpu.reciprocal %25 {approx = true} : vector<2x1x1xf32> -> vector<2x1x1xf32>
    %27 = vector.broadcast %26 : vector<2x1x1xf32> to vector<2x16x1xf32>
    %28 = arith.mulf %23, %27 : vector<2x16x1xf32>
    %c0_15 = arith.constant 0 : index
    %c0_16 = arith.constant 0 : index
    %c0_17 = arith.constant 0 : index
    %29 = vector.load %arg1[%c0_15, %c0_16, %c0_17] : memref<2x16x32xbf16, #tpu.memory_space<vmem>>, vector<2x16x32xbf16>
    %30 = arith.extf %29 : vector<2x16x32xbf16> to vector<2x16x32xf32>
    %31 = vector.broadcast %28 : vector<2x16x1xf32> to vector<2x16x32xf32>
    %32 = arith.mulf %31, %30 : vector<2x16x32xf32>
    %cst_18 = arith.constant dense<0.000000e+00> : vector<2x32xf32>
    %33 = vector.multi_reduction <add>, %32, %cst_18 [1] : vector<2x16x32xf32> to vector<2x32xf32>
    %c0_19 = arith.constant 0 : index
    %c0_20 = arith.constant 0 : index
    %34 = vector.load %arg6[%c0_19, %c0_20] : memref<2x32xf32, #tpu.memory_space<vmem>>, vector<2x32xf32>
    tpu.vector_store %arg6[%c0_19, %c0_20], %33 {strides = array<i32>} : memref<2x32xf32, #tpu.memory_space<vmem>>, vector<2x32xf32>,
    return
  }
  func.func @transform_0(%arg0: i32) -> (i32, i32, i32) {
    %c0_i32 = arith.constant 0 : i32
    %c0_i32_0 = arith.constant 0 : i32
    %c0_i32_1 = arith.constant 0 : i32
    return %arg0, %c0_i32, %c0_i32_0 : i32, i32, i32
  }
  func.func @transform_1(%arg0: i32) -> (i32, i32, i32) {
    %c0_i32 = arith.constant 0 : i32
    %c0_i32_0 = arith.constant 0 : i32
    %c0_i32_1 = arith.constant 0 : i32
    return %arg0, %c0_i32, %c0_i32_0 : i32, i32, i32
  }
  func.func @transform_2(%arg0: i32) -> (i32, i32) {
    %c0_i32 = arith.constant 0 : i32
    %c0_i32_0 = arith.constant 0 : i32
    %c0_i32_1 = arith.constant 0 : i32
    return %c0_i32, %c0_i32_0 : i32, i32
  }
  func.func @transform_3(%arg0: i32) -> (i32, i32) {
    %c0_i32 = arith.constant 0 : i32
    %c0_i32_0 = arith.constant 0 : i32
    %c0_i32_1 = arith.constant 0 : i32
    return %c0_i32, %c0_i32_0 : i32, i32
  }
  func.func @transform_4(%arg0: i32) -> (i32, i32) {
    %c0_i32 = arith.constant 0 : i32
    %c0_i32_0 = arith.constant 0 : i32
    %c0_i32_1 = arith.constant 0 : i32
    return %c0_i32, %c0_i32_0 : i32, i32
  }
  func.func @transform_5(%arg0: i32) -> (i32, i32) {
    %c0_i32 = arith.constant 0 : i32
    %c0_i32_0 = arith.constant 0 : i32
    return %arg0, %c0_i32 : i32, i32
  }
}

</mosaic_0001>

<bundles_post_ra>
// kernel: tpu_custom_call.1
= control target key start
LH: loop header
LB: loop body
LE: loop exit
PB: predicated region body
PF: predicated region fallthrough
CT: control target
= control target key end

     0   :  { %vm59_vm0 = vcmask 261120   ;;  %s444_s0 = inlined_call_operand.vmem [shape: bf16[2,16,32], index: 0, kind: input, shape index: {}]   ;;  %s445_s1 = inlined_call_operand.vmem [shape: s32[2,16,1], index: 1, kind: input, shape index: {}]   ;;  %s446_s2 = inlined_call_operand.vmem [shape: bf16[32,128], index: 2, kind: input, shape index: {}]   ;;  %s447_s3 = inlined_call_operand.vmem [shape: f32[1,128], index: 3, kind: input, shape index: {}]   ;;  %s448_s4 = inlined_call_operand.vmem [shape: f32[1,128], index: 4, kind: input, shape index: {}]   ;;  %s449_s5 = inlined_call_operand.hbm [shape: f32[2,32], index: 5, kind: output, shape index: {}]  }
   0x1   :  { %v296_v0 = vld [vmem:[%s446_s2] sm:$0xff]   ;;  %v297_v1 = vld [vmem:[%s446_s2 + $0x8] sm:$0xff]  }
   0x2   :  { %284 = vmatprep.subr.bf16.mxu0 %v296_v0  ;;  %v387_v2 = vld [vmem:[%s444_s0] sm:$0xff]  }
   0x3   :  { %10 = vsyncpa [#allocation3], 0  ;;  %285 = vmatpush3.bf16.msra.mxu0 %v296_v0  ;;  %v392_v3 = vld [vmem:[%s444_s0 + $0x8] sm:$0xff]   ;;  %288 = vmatprep.mubr.msk.bf16.mxu0 %vm59_vm0, %v387_v2  ;;  %v272_v4 = vld [vmem:[%s447_s3] ss:$0 sm:$0xff]  ;;  %v346_v22 = vmov 0  }
   0x4   :  { %286 = vmatprep.subr.bf16.mxu0 %v297_v1  ;;  %v279_v13 = vld [vmem:[%s448_s4] ss:$0 sm:$0xff]  ;;  %295 = vset.pattern.permute.xlu1 %v346_v22  ;;  %v140_v23 = vld [vmem:[%s445_s1 + $0x10] sm:$0xff]  ;;  %v141_v25 = vld [vmem:[%s445_s1 + $0x18] sm:$0xff]  ;;  %vm150_vm4 = vcmask 7168   ;;  %vm253_vm6 = vcmask 1041409  }
   0x5   :  { %294 = vset.pattern.permute.xlu0 %v346_v22  ;;  %v138_v24 = vld [vmem:[%s445_s1] sm:$0xff]  ;;  %vm144_vm1 = vcmp.ne.s32.totalorder %v140_v23, 0  ;;  %v139_v27 = vld [vmem:[%s445_s1 + $0x8] sm:$0xff]  ;;  %vm145_vm3 = vcmp.ne.s32.totalorder %v141_v25, 0  ;;  %s347_s1 = smov [#allocation2]   ;;  %vm256_vm7 = vcmask 254976  }
   0x6   :  { %vm142_vm2 = vcmp.ne.s32.totalorder %v138_v24, 0  ;;  %vm143_vm5 = vcmp.ne.s32.totalorder %v139_v27, 0  ;;  %v205_v27 = vunpack.c.l.bf16 %v387_v2  ;;  %s264_s9 = sshll.u32 %s347_s1, 4  ;;  %s265_s9 = int_to_ptr.vmem [resolvable:$true] %s264_s9 }
   0x7   :  { %287 = vmatpush3.bf16.msra.mxu0 %v297_v1  ;;  %s322_s10 = scalar_lea.vmem %s265_s9, 32  ;;  %p327_p1 = scmp.lt.s32.totalorder %s265_s9, %s265_s9 }
   0x8   :  { %p323_p0 = scmp.ne.s32.totalorder %s265_s9, %s322_s10  ;;  %p328_p2 = scmp.lt.s32.totalorder %s322_s10, %s322_s10 }
   0xa   :  { %289 = vmatmul.mubr.msk.bf16.vlgmr.msra.gmra.mrb[0].mxu0 %vm59_vm0, %v392_v3  ;;  %p329_p3 = por %p328_p2, %p327_p1 }
   0xc   :  { %p330_p4 = pnand %p329_p3, %p323_p0 }
  0xdd   :  { %v290_v5 = vpop.f32.mrb[0].mxu0 }
  0xde   :  { %v109_v6 = vadd.f32 %v290_v5, %v272_v4  ;;  %v100_v7 = vpop.f32.mrb[1].mxu0 }
  0xdf   :  { %v101_v8 = vadd.f32 %v272_v4, %v100_v7  ;;  %v291_v9 = vpop.f32.mrb[2].mxu0 }
  0xe0   :  { %302 = vtanh.f32 %v109_v6  ;;  %v112_v10 = vadd.f32 %v291_v9, %v272_v4  ;;  %v103_v11 = vpop.f32.mrb[3].mxu0 }
  0xe1   :  { %304 = vtanh.f32 %v101_v8  ;;  %v104_v12 = vadd.f32 %v272_v4, %v103_v11 }
  0xe2   :  { %306 = vtanh.f32 %v112_v10 }
  0xe3   :  { %308 = vtanh.f32 %v104_v12 }
  0xea   :  { %v303_v14 = vpop.eup %302 }
  0xeb   :  { %v305_v15 = vpop.eup %304  ;;  %v128_v16 = vmul.f32 %v303_v14, %v279_v13 }
  0xec   :  { %v307_v17 = vpop.eup %306  ;;  %v126_v18 = vmul.f32 %v305_v15, %v279_v13 }
  0xed   :  { %v309_v19 = vpop.eup %308  ;;  %134 = vadd.xlane.f32.xlu1 %v128_v16  ;;  %v129_v20 = vmul.f32 %v307_v17, %v279_v13 }
  0xee   :  { %130 = vadd.xlane.f32.xlu0 %v126_v18  ;;  %v127_v21 = vmul.f32 %v309_v19, %v279_v13 }
  0xf1   :  { %136 = vadd.xlane.f32.xlu1 %v129_v20 }
  0xf2   :  { %132 = vadd.xlane.f32.xlu0 %v127_v21 }
 0x17a   :  { %v135_v26 = vpop.xlane.xlu1 %134 }
 0x17b   :  { %v131_v28 = vpop.xlane.xlu0 %130  ;;  %v148_v29 = vsel %vm144_vm1, -1e+30, %v135_v26 }
 0x17c   :  { %v146_v30 = vsel %vm142_vm2, -1e+30, %v131_v28  ;;  %v160_v34 = vsel %vm150_vm4, %v148_v29, -inf }
 0x17d   :  { %v151_v37 = vsel %vm150_vm4, %v146_v30, -inf }
 0x17e   :  { %v137_v31 = vpop.xlane.xlu1 %136 }
 0x17f   :  { %v149_v32 = vsel %vm145_vm3, -1e+30, %v137_v31  ;;  %v133_v33 = vpop.xlane.xlu0 %132  ;;  %v207_v31 = vunpack.c.l.bf16 %v392_v3 }
 0x180   :  { %v161_v35 = vsel %vm150_vm4, %v149_v32, -inf  ;;  %v147_v36 = vsel %vm143_vm5, -1e+30, %v133_v33 }
 0x181   :  { %v162_v38 = vmax.f32 %v160_v34, %v161_v35  ;;  %v152_v39 = vsel %vm150_vm4, %v147_v36, -inf  ;;  %v208_v35 = vunpack.c.h.bf16 %v392_v3 }
 0x182   :  { %v153_v40 = vmax.f32 %v151_v37, %v152_v39 }
 0x183   :  { %v163_v41 = vrot.slane %v162_v38, 4 }
 0x184   :  { %v154_v42 = vrot.slane %v153_v40, 4 }
 0x185   :  { %v164_v43 = vmax.f32 %v162_v38, %v163_v41 }
 0x186   :  { %v155_v44 = vmax.f32 %v153_v40, %v154_v42 }
 0x187   :  { %v165_v45 = vrot.slane %v164_v43, 2 }
 0x188   :  { %v156_v46 = vrot.slane %v155_v44, 2 }
 0x189   :  { %v166_v47 = vmax.f32 %v164_v43, %v165_v45 }
 0x18a   :  { %v157_v48 = vmax.f32 %v155_v44, %v156_v46 }
 0x18b   :  { %v167_v49 = vrot.slane %v166_v47, 1 }
 0x18c   :  { %v158_v50 = vrot.slane %v157_v48, 1 }
 0x18d   :  { %v168_v51 = vmax.f32 %v166_v47, %v167_v49 }
 0x18e   :  { %v159_v52 = vmax.f32 %v157_v48, %v158_v50 }
 0x18f   :  { %v171_v53 = vsub.f32 %v148_v29, %v168_v51  ;;  %v172_v54 = vsub.f32 %v149_v32, %v168_v51  ;;  %v206_v29 = vunpack.c.h.bf16 %v387_v2 }
 0x190   :  { %v169_v55 = vsub.f32 %v146_v30, %v159_v52  ;;  %v170_v56 = vsub.f32 %v147_v36, %v159_v52 }
 0x191   :  { %v177_v57 = vmul.f32 1.442695, %v171_v53  ;;  %v179_v58 = vmul.f32 1.442695, %v172_v54 }
 0x192   :  { %v173_v59 = vmul.f32 1.442695, %v169_v55  ;;  %v175_v60 = vmul.f32 1.442695, %v170_v56 }
 0x193   :  { %310 = vpow2.f32 %v177_v57 }
 0x194   :  { %312 = vpow2.f32 %v179_v58 }
 0x195   :  { %314 = vpow2.f32 %v173_v59 }
 0x196   :  { %316 = vpow2.f32 %v175_v60 }
 0x19d   :  { %v311_v61 = vpop.eup %310 }
 0x19e   :  { %v313_v62 = vpop.eup %312  ;;  %v190_v63 = vsel %vm150_vm4, %v311_v61, 0.0 }
 0x19f   :  { %v315_v0 = vpop.eup %314  ;;  %v191_v1 = vsel %vm150_vm4, %v313_v62, 0.0 }
 0x1a0   :  { %v317_v4 = vpop.eup %316  ;;  %v192_v5 = vadd.f32 %v191_v1, %v190_v63  ;;  %v181_v6 = vsel %vm150_vm4, %v315_v0, 0.0 }
 0x1a1   :  { %v182_v7 = vsel %vm150_vm4, %v317_v4, 0.0 }
 0x1a2   :  { %v193_v8 = vrot.slane %v192_v5, 4  ;;  %v183_v9 = vadd.f32 %v182_v7, %v181_v6 }
 0x1a4   :  { %v194_v10 = vadd.f32 %v193_v8, %v192_v5  ;;  %v184_v11 = vrot.slane %v183_v9, 4 }
 0x1a6   :  { %v195_v12 = vrot.slane %v194_v10, 2  ;;  %v185_v13 = vadd.f32 %v184_v11, %v183_v9 }
 0x1a8   :  { %v186_v14 = vrot.slane %v185_v13, 2  ;;  %v196_v15 = vadd.f32 %v195_v12, %v194_v10 }
 0x1aa   :  { %v197_v16 = vrot.slane %v196_v15, 1  ;;  %v187_v17 = vadd.f32 %v186_v14, %v185_v13 }
 0x1ac   :  { %v198_v18 = vadd.f32 %v197_v16, %v196_v15  ;;  %v188_v19 = vrot.slane %v187_v17, 1 }
 0x1ae   :  { %318 = vrcp.f32 %v198_v18  ;;  %v189_v20 = vadd.f32 %v188_v19, %v187_v17 }
 0x1b0   :  { %320 = vrcp.f32 %v189_v20 }
 0x1b8   :  { %v319_v21 = vpop.eup %318 }
 0x1b9   :  { %v203_v22 = vmul.f32 %v319_v21, %v311_v61  ;;  %v204_v26 = vmul.f32 %v319_v21, %v313_v62 }
 0x1ba   :  { %v321_v23 = vpop.eup %320 }
 0x1bb   :  { %221 = vperm.xlu1 %295, %v203_v22   ;;  %v201_v24 = vmul.f32 %v321_v23, %v315_v0  ;;  %v202_v25 = vmul.f32 %v321_v23, %v317_v4 }
 0x1bd   :  { %211 = vperm.xlu0 %294, %v201_v24  }
 0x1bf   :  { %216 = vperm.xlu1 %295, %v202_v25  }
 0x1c3   :  { %226 = vperm.xlu1 %295, %v204_v26  }
 0x23a   :  { %v222_v28 = vpop.permute.xlu1 %221 }
 0x23b   :  { %v231_v36 = vmul.f32 %v222_v28, %v207_v31 }
 0x23c   :  { %v212_v30 = vpop.permute.xlu0 %211 }
 0x23d   :  { %v229_v32 = vmul.f32 %v212_v30, %v205_v27  ;;  %v242_v43 = vsel %vm59_vm0, %v231_v36, 0.0 }
 0x23e   :  { %v217_v33 = vpop.permute.xlu1 %216 }
 0x23f   :  { %v230_v34 = vmul.f32 %v217_v33, %v206_v29  ;;  %v233_v37 = vsel %vm59_vm0, %v229_v32, 0.0 }
 0x241   :  { %v234_v38 = vsel %vm59_vm0, %v230_v34, 0.0 }
 0x242   :  { %v235_v39 = vadd.f32 %v234_v38, %v233_v37  ;;  %v227_v40 = vpop.permute.xlu1 %226 }
 0x243   :  { %v232_v41 = vmul.f32 %v227_v40, %v208_v35 }
 0x244   :  { %v236_v42 = vrot.slane %v235_v39, 4 }
 0x245   :  { %v243_v2 = vsel %vm59_vm0, %v232_v41, 0.0 }
 0x246   :  { %v237_v44 = vadd.f32 %v236_v42, %v235_v39  ;;  %v244_v45 = vadd.f32 %v243_v2, %v242_v43 }
 0x248   :  { %v238_v46 = vrot.slane %v237_v44, 2  ;;  %v245_v47 = vrot.slane %v244_v45, 4 }
 0x24a   :  { %v239_v48 = vadd.f32 %v238_v46, %v237_v44  ;;  %v246_v49 = vadd.f32 %v245_v47, %v244_v45 }
 0x24c   :  { %v247_v3 = vrot.slane %v246_v49, 2  ;;  %v240_v51 = vrot.slane %v239_v48, 1 }
 0x24e   :  { %v248_v50 = vadd.f32 %v247_v3, %v246_v49  ;;  %v241_v53 = vadd.f32 %v240_v51, %v239_v48 }
 0x250   :  { %v249_v52 = vrot.slane %v248_v50, 1 }
 0x252   :  { %v250_v54 = vadd.f32 %v249_v52, %v248_v50 }
 0x254   :  { %v254_v55 = vsel %vm253_vm6, %v250_v54, %v241_v53 }
 0x255   :  { %257 = vst.msk [vmem:[#allocation2] sm:$0x3] %vm256_vm7, %v254_v55 }
 0x256   :  { %333 = shalt.err (!%p330_p4)
}
 0x257   :  { %s334_s13 = scalar_lea.hbm %s449_s5, 32 }
 0x258   :  { %p335_p5 = scmp.ne.s32.totalorder %s449_s5, %s334_s13  ;;  %p338_p6 = scmp.lt.u32.totalorder %s334_s13, %s449_s5 }
 0x25a   :  { %p340_p7 = pnand %p338_p6, %p335_p5 }
 0x25c   :  { %343 = shalt.err (!%p340_p7)
}
 0x25d   :  { %267 = dma.vmem_to_hbm [thread:$0]  %s265_s9, 32, %s449_s5, [#allocation3]  }
 0x25e   :  { %344 = dma.done.wait [#allocation3], 32  }
 0x25f   :  { %345 = vsyncadd [#allocation3], 4294967264 }
 0x260   :  { %271 = vsyncpa [#allocation3], 1 }

</bundles_post_ra>
